<compile_context>
chip_gen: v7x
topology: tpu7x:2x2x1
jax: 0.10.0
libtpu: 0.0.40
codegen_flags: <defaults>
</compile_context>

<pallas_src>
import math

import jax
import jax.numpy as jnp
from jax import lax
from jax.experimental import pallas as pl
from jax.experimental.pallas import tpu as pltpu


def make_bert_self_attention(seq_len, hidden, num_heads):
    head_dim = hidden // num_heads
    scale = 1.0 / math.sqrt(float(head_dim))  # folded into query weights/bias

    def kernel(x_ref, w_ref, b_ref, out_ref):
        # x_ref:   (1, S, H)      bf16 -- one batch element (shared across heads)
        # w_ref:   (1, H, 3*Dh)   bf16 -- this head's packed [Wq | Wk | Wv], pre-T
        # b_ref:   (1, 1, 3*Dh)   f32  -- this head's packed bias
        # out_ref: (1, 1, S, Dh)  f32  -- this (batch, head) context block
        x = x_ref[0]                                        # (S, H)   bf16
        w = w_ref[0]                                        # (H, 3Dh) bf16

        # Fused per-head QKV projection: one MXU matmul, f32 accumulation.
        qkv = jnp.dot(x, w, preferred_element_type=jnp.float32) + b_ref[0]  # (S, 3Dh)

        q = qkv[:, :head_dim].astype(jnp.bfloat16)          # (S, Dh), pre-scaled
        k = qkv[:, head_dim:2 * head_dim].astype(jnp.bfloat16)
        v = qkv[:, 2 * head_dim:].astype(jnp.bfloat16)

        # scores = q @ k^T: contract the last dims of both operands
        # (no materialized transpose of k).
        scores = lax.dot_general(
            q, k, dimension_numbers=(((1,), (1,)), ((), ())),
            preferred_element_type=jnp.float32)             # (S, S) f32

        # Numerically stable softmax; exp in bf16 (EUP bf16 path on v6e/v7x),
        # accumulation in f32, normalization deferred past the P.V matmul.
        m = jnp.max(scores, axis=-1, keepdims=True)
        e = jnp.exp((scores - m).astype(jnp.bfloat16))      # (S, S) bf16
        l = jnp.sum(e.astype(jnp.float32), axis=-1, keepdims=True)  # (S, 1) f32

        ctx = jnp.dot(e, v, preferred_element_type=jnp.float32)     # (S, Dh) f32
        out_ref[0, 0] = ctx * pl.reciprocal(l, approx=True)

        # TODO(synk): attention_mask, cross-attention (encoder_hidden_states)
        # and attention-probability dropout are not wired in (inference path).

    def forward(hidden_states, wq, wk, wv, bq, bk, bv):
        B, S, H = hidden_states.shape
        assert S == seq_len and H == hidden
        NH, Dh = num_heads, head_dim

        # One-time wrapper-side weight transform:
        #  * fold 1/sqrt(Dh) into the query projection (exact),
        #  * pre-transpose to the x @ W^T layout PyTorch Linear implies,
        #  * split head-major so each head's Q/K/V is one contiguous (H, 3*Dh)
        #    tile (head-aligned lane layout in the kernel),
        #  * cast matmul operands to bf16 (accumulation stays f32 in-kernel).
        def per_head_w(w):                                   # w: (H_out, H_in)
            return w.T.reshape(H, NH, Dh).transpose(1, 0, 2)  # (NH, H, Dh)

        wqkv = jnp.concatenate(
            [per_head_w(wq * scale), per_head_w(wk), per_head_w(wv)],
            axis=2).astype(jnp.bfloat16)                      # (NH, H, 3*Dh)
        bqkv = jnp.concatenate(
            [(bq * scale).reshape(NH, 1, Dh),
             bk.reshape(NH, 1, Dh),
             bv.reshape(NH, 1, Dh)],
            axis=2).astype(jnp.float32)                       # (NH, 1, 3*Dh)

        x_bf16 = hidden_states.astype(jnp.bfloat16)

        # Explicit VMEM budget: double-buffered blocks + in-kernel
        # intermediates, with 2x slack, capped at 64 MiB (v7x physical VMEM).
        est_vmem = 2 * (
            2 * S * H * 2            # x block (bf16), double-buffered
            + 2 * H * 3 * Dh * 2     # weight block (bf16), double-buffered
            + 2 * 3 * Dh * 4         # bias block (f32)
            + 2 * S * Dh * 4         # output block (f32), double-buffered
            + S * 3 * Dh * 4         # qkv intermediate (f32)
            + 2 * S * S * 4          # scores + softmax temporaries (f32)
            + S * S * 2)             # bf16 probs
        vmem_limit = int(min(64 * 1024 * 1024, max(8 * 1024 * 1024, est_vmem)))

        grid = (B, NH)
        ctx = pl.pallas_call(
            kernel,
            out_shape=jax.ShapeDtypeStruct((B, NH, S, Dh), jnp.float32),
            grid_spec=pltpu.PrefetchScalarGridSpec(
                num_scalar_prefetch=0,
                grid=grid,
                in_specs=[
                    pl.BlockSpec((1, S, H), lambda b, h: (b, 0, 0)),
                    pl.BlockSpec((1, H, 3 * Dh), lambda b, h: (h, 0, 0)),
                    pl.BlockSpec((1, 1, 3 * Dh), lambda b, h: (h, 0, 0)),
                ],
                out_specs=pl.BlockSpec((1, 1, S, Dh),
                                       lambda b, h: (b, h, 0, 0)),
            ),
            compiler_params=pltpu.CompilerParams(
                dimension_semantics=("parallel", "parallel"),
                vmem_limit_bytes=vmem_limit,
            ),
        )(x_bf16, wqkv, bqkv)                                 # (B, NH, S, Dh)

        # Undo transpose_for_scores: (B, NH, S, Dh) -> (B, S, H)
        return ctx.transpose(0, 2, 1, 3).reshape(B, S, H)

    return forward


def reference(hidden_states, wq, wk, wv, bq, bk, bv, num_heads):
    B, S, H = hidden_states.shape
    Dh = H // num_heads

    def proj(x, w, b):
        return x @ w.T + b

    def split(x):
        return x.reshape(B, S, num_heads, Dh).transpose(0, 2, 1, 3)

    q = split(proj(hidden_states, wq, bq))
    k = split(proj(hidden_states, wk, bk))
    v = split(proj(hidden_states, wv, bv))
    scores = jnp.einsum("bhqd,bhkd->bhqk", q, k) / jnp.sqrt(jnp.float32(Dh))
    probs = jax.nn.softmax(scores, axis=-1)
    ctx = jnp.einsum("bhqk,bhkd->bhqd", probs, v)
    return ctx.transpose(0, 2, 1, 3).reshape(B, S, H)


if __name__ == "__main__":
    B, S, H, NH = 2, 8, 32, 4
    key = jax.random.PRNGKey(0)
    k0, k1, k2, k3, k4, k5, k6 = jax.random.split(key, 7)

    x = jax.random.normal(k0, (B, S, H), dtype=jnp.float32)
    wq = jax.random.normal(k1, (H, H), dtype=jnp.float32) * 0.05
    wk = jax.random.normal(k2, (H, H), dtype=jnp.float32) * 0.05
    wv = jax.random.normal(k3, (H, H), dtype=jnp.float32) * 0.05
    bq = jax.random.normal(k4, (H,), dtype=jnp.float32) * 0.01
    bk = jax.random.normal(k5, (H,), dtype=jnp.float32) * 0.01
    bv = jax.random.normal(k6, (H,), dtype=jnp.float32) * 0.01

    fwd = make_bert_self_attention(S, H, NH)
    out = fwd(x, wq, wk, wv, bq, bk, bv)
    out = jax.block_until_ready(out)

    ref = reference(x, wq, wk, wv, bq, bk, bv, NH)
    assert out.shape == (B, S, H)
    # bf16 matmul inputs (f32 accumulation) -> relaxed tolerance vs f32 ref.
    assert jnp.allclose(out, ref, atol=3e-2, rtol=3e-2), "mismatch vs reference"
    print("KERNEL_OK")
</pallas_src>

<mosaic_0001>
module attributes {stable_mosaic.version = 11 : i64} {
  func.func @kernel(%arg0: i32, %arg1: i32, %arg2: memref<1x8x32xbf16, #tpu.memory_space<vmem>>, %arg3: memref<1x32x24xbf16, #tpu.memory_space<vmem>>, %arg4: memref<1x1x24xf32, #tpu.memory_space<vmem>>, %arg5: memref<1x1x8x8xf32, #tpu.memory_space<vmem>>) attributes {dimension_semantics = [#tpu.dimension_semantics<parallel>, #tpu.dimension_semantics<parallel>], iteration_bounds = array<i64: 2, 4>, scalar_prefetch = 0 : i64, scratch_operands = 0 : i64, tpu.core_type = #tpu.core_type<tc>, window_params = [{transform_indices = @transform_0, window_bounds = array<i64: 1, 8, 32>}, {transform_indices = @transform_1, window_bounds = array<i64: 1, 32, 24>}, {transform_indices = @transform_2, window_bounds = array<i64: 1, 1, 24>}, {transform_indices = @transform_3, window_bounds = array<i64: 1, 1, 8, 8>}]} {
    %c0 = arith.constant 0 : index
    %c0_0 = arith.constant 0 : index
    %c0_1 = arith.constant 0 : index
    %0 = vector.load %arg2[%c0, %c0_0, %c0_1] : memref<1x8x32xbf16, #tpu.memory_space<vmem>>, vector<1x8x32xbf16>
    %1 = vector.shape_cast %0 : vector<1x8x32xbf16> to vector<8x32xbf16>
    %c0_2 = arith.constant 0 : index
    %c0_3 = arith.constant 0 : index
    %c0_4 = arith.constant 0 : index
    %2 = vector.load %arg3[%c0_2, %c0_3, %c0_4] : memref<1x32x24xbf16, #tpu.memory_space<vmem>>, vector<1x32x24xbf16>
    %3 = vector.shape_cast %2 : vector<1x32x24xbf16> to vector<32x24xbf16>
    %cst = arith.constant dense<0.000000e+00> : vector<8x24xf32>
    %4 = tpu.matmul %1, %3, %cst {dimension_numbers = #tpu.dot_dimension_numbers<[1], [0], [0], [1], [0, 0, 1, 1], [], []>} : vector<8x32xbf16>, vector<32x24xbf16>, vector<8x24xf32> -> vector<8x24xf32>
    %c0_5 = arith.constant 0 : index
    %c0_6 = arith.constant 0 : index
    %c0_7 = arith.constant 0 : index
    %5 = vector.load %arg4[%c0_5, %c0_6, %c0_7] : memref<1x1x24xf32, #tpu.memory_space<vmem>>, vector<1x1x24xf32>
    %6 = vector.shape_cast %5 : vector<1x1x24xf32> to vector<1x24xf32>
    %7 = vector.broadcast %6 : vector<1x24xf32> to vector<8x24xf32>
    %8 = arith.addf %4, %7 : vector<8x24xf32>
    %9 = vector.extract_strided_slice %8 {offsets = [0, 0], sizes = [8, 8], strides = [1, 1]} : vector<8x24xf32> to vector<8x8xf32>
    %10 = arith.truncf %9 : vector<8x8xf32> to vector<8x8xbf16>
    %11 = vector.extract_strided_slice %8 {offsets = [0, 8], sizes = [8, 8], strides = [1, 1]} : vector<8x24xf32> to vector<8x8xf32>
    %12 = arith.truncf %11 : vector<8x8xf32> to vector<8x8xbf16>
    %13 = vector.extract_strided_slice %8 {offsets = [0, 16], sizes = [8, 8], strides = [1, 1]} : vector<8x24xf32> to vector<8x8xf32>
    %14 = arith.truncf %13 : vector<8x8xf32> to vector<8x8xbf16>
    %cst_8 = arith.constant dense<0.000000e+00> : vector<8x8xf32>
    %15 = tpu.matmul %10, %12, %cst_8 {dimension_numbers = #tpu.dot_dimension_numbers<[1], [1], [0], [0], [0, 0, 1, 0], [], []>} : vector<8x8xbf16>, vector<8x8xbf16>, vector<8x8xf32> -> vector<8x8xf32>
    %cst_9 = arith.constant dense<0xFF800000> : vector<8xf32>
    %16 = vector.multi_reduction <maximumf>, %15, %cst_9 [1] : vector<8x8xf32> to vector<8xf32>
    %17 = vector.shape_cast %16 : vector<8xf32> to vector<8x1xf32>
    %18 = vector.broadcast %17 : vector<8x1xf32> to vector<8x8xf32>
    %19 = arith.subf %15, %18 : vector<8x8xf32>
    %20 = arith.truncf %19 : vector<8x8xf32> to vector<8x8xbf16>
    %21 = math.exp %20 : vector<8x8xbf16>
    %22 = arith.extf %21 : vector<8x8xbf16> to vector<8x8xf32>
    %cst_10 = arith.constant dense<0.000000e+00> : vector<8xf32>
    %23 = vector.multi_reduction <add>, %22, %cst_10 [1] : vector<8x8xf32> to vector<8xf32>
    %24 = vector.shape_cast %23 : vector<8xf32> to vector<8x1xf32>
    %cst_11 = arith.constant dense<0.000000e+00> : vector<8x8xf32>
    %25 = tpu.matmul %21, %14, %cst_11 {dimension_numbers = #tpu.dot_dimension_numbers<[1], [0], [0], [1], [0, 0, 1, 1], [], []>} : vector<8x8xbf16>, vector<8x8xbf16>, vector<8x8xf32> -> vector<8x8xf32>
    %26 = tpu.reciprocal %24 {approx = true} : vector<8x1xf32> -> vector<8x1xf32>
    %27 = vector.broadcast %26 : vector<8x1xf32> to vector<8x8xf32>
    %28 = arith.mulf %25, %27 : vector<8x8xf32>
    %c0_12 = arith.constant 0 : index
    %c0_13 = arith.constant 0 : index
    %c0_14 = arith.constant 0 : index
    %c0_15 = arith.constant 0 : index
    %29 = vector.load %arg5[%c0_12, %c0_13, %c0_14, %c0_15] : memref<1x1x8x8xf32, #tpu.memory_space<vmem>>, vector<1x1x8x8xf32>
    %30 = vector.shape_cast %29 : vector<1x1x8x8xf32> to vector<8x8xf32>
    %31 = vector.shape_cast %28 : vector<8x8xf32> to vector<1x1x8x8xf32>
    tpu.vector_store %arg5[%c0_12, %c0_13, %c0_14, %c0_15], %31 {strides = array<i32>} : memref<1x1x8x8xf32, #tpu.memory_space<vmem>>, vector<1x1x8x8xf32>,
    return
  }
  func.func @transform_0(%arg0: i32, %arg1: i32) -> (i32, i32, i32) {
    %c0_i32 = arith.constant 0 : i32
    %c0_i32_0 = arith.constant 0 : i32
    %c0_i32_1 = arith.constant 0 : i32
    return %arg0, %c0_i32, %c0_i32_0 : i32, i32, i32
  }
  func.func @transform_1(%arg0: i32, %arg1: i32) -> (i32, i32, i32) {
    %c0_i32 = arith.constant 0 : i32
    %c0_i32_0 = arith.constant 0 : i32
    %c0_i32_1 = arith.constant 0 : i32
    return %arg1, %c0_i32, %c0_i32_0 : i32, i32, i32
  }
  func.func @transform_2(%arg0: i32, %arg1: i32) -> (i32, i32, i32) {
    %c0_i32 = arith.constant 0 : i32
    %c0_i32_0 = arith.constant 0 : i32
    %c0_i32_1 = arith.constant 0 : i32
    return %arg1, %c0_i32, %c0_i32_0 : i32, i32, i32
  }
  func.func @transform_3(%arg0: i32, %arg1: i32) -> (i32, i32, i32, i32) {
    %c0_i32 = arith.constant 0 : i32
    %c0_i32_0 = arith.constant 0 : i32
    %c0_i32_1 = arith.constant 0 : i32
    return %arg0, %arg1, %c0_i32, %c0_i32_0 : i32, i32, i32, i32
  }
}

</mosaic_0001>

<bundles_post_ra>
// kernel: tpu_custom_call.1
= control target key start
LH: loop header
LB: loop body
LE: loop exit
PB: predicated region body
PF: predicated region fallthrough
CT: control target
= control target key end

     0   :  { %8 = vsyncpa [#allocation3], 0  ;;  %s909_s0 = inlined_call_operand.vmem [shape: bf16[2,8,32], index: 0, kind: input, shape index: {}]   ;;  %s910_s1 = inlined_call_operand.vmem [shape: bf16[4,32,24], index: 1, kind: input, shape index: {}]   ;;  %s911_s2 = inlined_call_operand.vmem [shape: f32[4,1,24], index: 2, kind: input, shape index: {}]   ;;  %s912_s3 = inlined_call_operand.hbm [shape: f32[2,4,8,8], index: 3, kind: output, shape index: {}]  }
   0x1   :  { %10 = vsyncpa [#allocation3 + $0x1], 0  ;;  %s757_s12 = smov 0   ;;  %s759_s13 = smov 0  }
   0x2   :  { %s761_s14 = smov 0   ;;  %s763_s15 = smov 0  }
   0x3   :  { %s765_s16 = smov 0   ;;  %s767_s17 = smov 0  }
   0x4   :  { %s769_s18 = smov 0   ;;  %s771_s19 = smov 0  }
   0x5 LB: > { %s507_s20 = sadd.s32 4294967295, %s730_s19   ;;  %s508_s21 = sadd.s32 4294967294, %s730_s19   ;;  %s730_s19 = sphi %s771_s19, %s16_s19   ;;  %s726_s18 = sphi %s769_s18, %s921_s18   ;;  %s722_s17 = sphi %s767_s17, %s920_s17   ;;  %s718_s16 = sphi %s765_s16, %s919_s16   ;;  %s714_s15 = sphi %s763_s15, %s918_s15   ;;  %s710_s14 = sphi %s761_s14, %s917_s14   ;;  %s706_s13 = sphi %s759_s13, %s916_s13   ;;  %s702_s12 = sphi %s757_s12, %s915_s12  }
   0x6   : > { %s25_s22 = sadd.s32 1, %s722_s17  ;;  %s28_s23 = sadd.s32 1, %s726_s18 }
   0x7   : > { %p26_p0 = scmp.ge.s32.totalorder %s25_s22, 4  ;;  %p125_p1 = scmp.ne.s32.totalorder %s710_s14, %s706_s13 }
   0x8   : > { %p126_p2 = scmp.eq.s32.totalorder %s507_s20, 7  ;;  %p131_p5 = scmp.ne.s32.totalorder %s706_s13, %s702_s12 }
   0x9   : > { %s923_s22 = smov (%p26_p0, %s25_s22), 0  ;;  %s925_s23 = smov (!%p26_p0, %s28_s23), %s726_s18 }
   0xa   : > { %s111_s24 = ssub.s32 %s722_s17, %s923_s22  ;;  %p808_p3 = por %p126_p2, %p125_p1 }
   0xb   : > { %p30_p4 = scmp.ge.s32.totalorder %s925_s23, 2  ;;  %p132_p6 = scmp.eq.s32.totalorder %s508_s21, 7 }
   0xc   : > { %p511_p7 = scmp.ge.s32.totalorder %s730_s19, 1  ;;  %p171_p9 = scmp.lt.s32.totalorder %s730_s19, 9 }
   0xd   : > { %s927_s23 = smov (%p30_p4, %s925_s23), 0  ;;  %p817_p8 = por %p132_p6, %p131_p5 }
   0xe   : > { %s110_s27 = ssub.s32 %s726_s18, %s927_s23  ;;  %s115_s28 = sadd.s32 1, %s710_s14 }
   0xf   : > { %s112_s29 = sor.u32 %s111_s24, %s110_s27  ;;  %p172_p10 = pnand %p511_p7, %p171_p9 }
  0x10   : > { %p113_p11 = scmp.eq.s32.totalorder %s112_s29, 0  ;;  %p206_p12 = scmp.lt.s32.totalorder (!%p172_p10), %s714_s15, 3  ;;  %v732_v0 = vmov (!%p172_p10), 0.0   ;;  %vm733_vm0 = vmmov (!%p172_p10), 0   ;;  %vm239_vm1 = vcmask (!%p172_p10), 261120   ;;  %vm351_vm2 = vcmask (!%p172_p10), 1043456  }
  0x11   : > { %175 = sbr.rel (%p172_p10) target bundleno = 976 (0x3d0), region = 32  ;;  %p202_p13 = scmp.lt.s32.totalorder (!%p172_p10), %s718_s16, 1  ;;  %535 = vmatprep.subr.bf16.mxu0 (!%p172_p10), %v732_v0  ;;  %539 = vmatprep.mubr.msk.bf16.mxu0 (!%p172_p10), %vm733_vm0, %v732_v0  ;;  %vm287_vm3 = vcmask (!%p172_p10), 64512  }
  0x12   : > { %s826_s30 = scalar_select %p113_p11, %s710_s14, %s115_s28  }
  0x13   : > { %543 = vmatprep.subr.bf16.mxu1 (!%p172_p10), %v732_v0  ;;  %545 = vmatprep.mubr.msk.bf16.mxu1 (!%p172_p10), %vm733_vm0, %v732_v0  ;;  %s734_s29 = smov (!%p172_p10), 112   ;;  %s523_s7 = sshll.u32 (!%p172_p10), %s718_s16, 2 }
  0x14   : > { %s410_s8 = sadd.s32 (!%p172_p10), %s714_s15, %s523_s7  ;;  %s736_s27 = smov (!%p172_p10), [#allocation2]  }
  0x18   : > { %s207_s4 = scalar_select %p206_p12, %s714_s15, 3 }
  0x19   : > { %s203_s5 = scalar_select %p202_p13, %s718_s16, 1 }
  0x1a   : > { %s527_s6 = sshll.u32 %s207_s4, 4  ;;  %s213_s28 = scalar_lea.vmem %s911_s2, %s207_s4 }
  0x1b   : > { %s210_s9 = scalar_lea.vmem %s910_s1, %s527_s6  ;;  %s513_s10 = sshll.u32 %s203_s5, 2  ;;  %v516_v4 = vld [vmem:[%s213_s28] ss:$0 sm:$0xff] }
  0x1c   : > { %v630_v1 = vld [vmem:[%s210_s9] sm:$0xff]   ;;  %v631_v2 = vld [vmem:[%s210_s9 + $0x8] sm:$0xff]   ;;  %s205_s21 = scalar_lea.vmem %s909_s0, %s513_s10  ;;  %s735_s5 = smov 120  }
  0x1d   : > { %536 = vmatpush3.bf16.msra.mxu0 %v630_v1  ;;  %v215_v3 = vld [vmem:[%s205_s21] sm:$0xf]  ;;  %s199_s4 = sand.u32 1, %s706_s13   ;;  %s524_s9 = sshll.u32 %s410_s8, 7 }
  0x1e   : > { %537 = vmatprep.subr.bf16.mxu0 %v732_v0  ;;  %s512_s6 = sshll.u32 %s199_s4, 3  ;;  %s855_s24 = scalar_lea.hbm %s912_s3, %s524_s9 }
  0x1f   : > { %s201_s10 = scalar_lea.vmem [#allocation2], %s512_s6  ;;  %s399_s15 = scalar_lea.sflag [#allocation3], %s199_s4 }
  0x20   : > { %s414_s11 = sshll.u32 %s201_s10, 4  ;;  %s640_s28 = sshll.u32 %s736_s27, 4  ;;  %s857_s11 = int_to_ptr.vmem [resolvable:$true] %s414_s11  ;;  %s641_s28 = int_to_ptr.vmem [resolvable:$false] %s640_s28 }
  0x21   : > { %538 = vmatpush3.bf16.msra.mxu0 %v631_v2  ;;  %s636_s16 = scalar_lea.vmem %s857_s11, 128  ;;  %p643_p4 = scmp.lt.s32.totalorder %s857_s11, %s641_s28 }
  0x22   : > { %549 = vmatprep.subr.bf16.mxu0 %v732_v0  ;;  %p637_p0 = scmp.ne.s32.totalorder %s857_s11, %s636_s16 }
  0x24   : > { %540 = vmatmul.mubr.msk.bf16.vlgmr.msra.gmra.mrb[0].mxu0 %vm239_vm1, %v215_v3  ;;  %p638_p1 = pnand %p637_p0, %p808_p3 }
  0x25   : > { %551 = vmatprep.mubr.msk.bf16.mxu0 %vm733_vm0, %v732_v0 }
  0x26   : > { %p639_p2 = pneg %p638_p1 }
  0xf7   : > { %v277_v5 = vpop.f32.mrb[0].mxu0 }
  0xf8   : > { %v278_v6 = vadd.f32 %v516_v4, %v277_v5  ;;  %v541_v7 = vpop.f32.mrb[1].mxu0 }
  0xf9   : > { %v280_v8 = vpop.f32.mrb[2].mxu0 }
  0xfa   : > { %v283_v9 = vpack.c.bf16 %v278_v6, %v278_v6  ;;  %v542_v10 = vpop.f32.mrb[3].mxu0 }
  0xfc   : > { %346 = vrot.lane.b32.xlu1 %v283_v9, %s734_s29  ;;  %285 = vrot.lane.b32.xlu0 %v283_v9, %s735_s5  ;;  %s642_s29 = scalar_lea.vmem %s641_s28, 256 }
  0xfd   : > { %p644_p5 = scmp.lt.s32.totalorder %s642_s29, %s636_s16 }
  0xff   : > { %p645_p6 = por %p644_p5, %p643_p4 }
 0x101   : > { %p646_p7 = pnand %p645_p6, %p639_p2 }
 0x16e   : > { %v347_v11 = vpop.permute.xlu1 %346  ;;  %v286_v12 = vpop.permute.xlu0 %285 }
 0x16f   : > { %v353_v13 = vsel %vm351_vm2, %v347_v11, 0  ;;  %v292_v14 = vsel %vm287_vm3, %v286_v12, 0 }
 0x170   : > { %544 = vmatpush3.bf16.xpose.msra.mxu1 %v292_v14  ;;  %550 = vmatpush3.bf16.msra.mxu0 %v353_v13 }
 0x177   : > { %546 = vmatmul.mubr.msk.bf16.vlgmr.msra.gmra.mrb[0].mxu1 %vm287_vm3, %v283_v9 }
 0x24a   : > { %v328_v15 = vpop.f32.mrb[0].mxu1 }
 0x24b   : > { %v547_v16 = vpop.f32.mrb[1].mxu1  ;;  %v334_v17 = vsel %vm287_vm3, %v328_v15, -inf }
 0x24c   : > { %335 = vmax.xlane.f32.xlu0 %v334_v17  ;;  %v331_v18 = vpop.f32.mrb[2].mxu1 }
 0x24d   : > { %v548_v19 = vpop.f32.mrb[3].mxu1 }
 0x2d9   : > { %v336_v20 = vpop.xlane.xlu0 %335 }
 0x2da   : > { %v337_v21 = vsub.f32 %v328_v15, %v336_v20 }
 0x2dc   : > { %v338_v22 = vpack.c.bf16 %v337_v21, %v337_v21 }
 0x2de   : > { %v340_v23 = vmul.bf16 1069105081, %v338_v22 }
 0x2e0   : > { %632 = vpow.bf16 %v340_v23 }
 0x2eb   : > { %v633_v24 = vpop.eup %632 }
 0x2ec   : > { %552 = vmatmul.mubr.msk.bf16.vlgmr.msra.gmra.mrb[4].mxu0 %vm287_vm3, %v633_v24  ;;  %v342_v25 = vunpack.c.l.bf16 %v633_v24 }
 0x2ee   : > { %v343_v26 = vsel %vm287_vm3, %v342_v25, 0.0 }
 0x2ef   : > { %344 = vadd.xlane.f32.xlu1 %v343_v26 }
 0x37c   : > { %v345_v27 = vpop.xlane.xlu1 %344 }
 0x37d   : > { %634 = vrcp.f32 %v345_v27 }
 0x387   : > { %v635_v28 = vpop.eup %634 }
 0x3bf   : > { %v389_v29 = vpop.f32.mrb[4].mxu0 }
 0x3c0   : > { %v396_v30 = vmul.f32 %v635_v28, %v389_v29  ;;  %v553_v31 = vpop.f32.mrb[5].mxu0 }
 0x3c1   : > { %v392_v32 = vpop.f32.mrb[6].mxu0 }
 0x3c2   : > { %v554_v33 = vpop.f32.mrb[7].mxu0  ;;  %397 = vst.msk [vmem:[%s201_s10] sm:$0xff] %vm287_vm3, %v396_v30 }
 0x3c3   : > { %649 = shalt.err (!%p646_p7)
}
 0x3c4   : > { %s650_s5 = scalar_lea.hbm %s855_s24, 128  ;;  %s654_s7 = scalar_lea.hbm %s912_s3, 1024 }
 0x3c5   : > { %p651_p9 = scmp.ne.s32.totalorder %s855_s24, %s650_s5  ;;  %p655_p12 = scmp.lt.u32.totalorder %s855_s24, %s912_s3 }
 0x3c6   : > { %p656_p13 = scmp.lt.u32.totalorder %s654_s7, %s650_s5  ;;  %p658_p1 = scmp.lt.u32.totalorder %s650_s5, %s855_s24 }
 0x3c7   : > { %p652_p10 = pnand %p651_p9, %p808_p3 }
 0x3c8   : > { %p657_p0 = por %p656_p13, %p655_p12 }
 0x3c9   : > { %p653_p11 = pneg %p652_p10 }
 0x3ca   : > { %p659_p2 = por %p658_p1, %p657_p0 }
 0x3cc   : > { %p660_p4 = pnand %p659_p2, %p653_p11 }
 0x3ce   : > { %663 = shalt.err (!%p660_p4)
}
 0x3cf   : > { %555 = dma.vmem_to_hbm [thread:$0]  (%p808_p3), %s857_s11, 128, %s855_s24, %s399_s15  }
 0x3d0 PF: > { %p561_p5 = scmp.ge.s32.totalorder %s730_s19, 2  ;;  %s426_s10 = sand.u32 1, %s702_s12  }
 0x3d1   : > { %s427_s20 = scalar_lea.sflag [#allocation3], %s426_s10 }
 0x3d2   : > { %p558_p6 = pnand %p561_p5, %p817_p8 }
 0x3d4   : > { %697 = dma.done.wait (!%p558_p6), %s427_s20, 128  }
 0x3d5   : > { %699 = vsyncadd (!%p558_p6), %s427_s20, 4294967168  ;;  %s16_s19 = sadd.s32 1, %s730_s19   ;;  %s915_s12 = smov %s706_s13 }
 0x3d6   : > { %p13_p7 = scmp.ge.s32.totalorder %s16_s19, 10   ;;  %s916_s13 = smov %s710_s14 }
 0x3d7   : > { %s917_s14 = smov %s826_s30  ;;  %s918_s15 = smov %s722_s17 }
 0x3d8   : > { %s919_s16 = smov %s726_s18  ;;  %s920_s17 = smov %s923_s22 }
 0x3d9   : > { %s921_s18 = smov %s927_s23  ;;  %15 = sbr.rel (!%p13_p7) target bundleno = 5 (0x5), region = 73 }
 0x3e0   :  { %432 = vsyncpa [#allocation3], 1 }
 0x3e1   :  { %434 = vsyncpa [#allocation3 + $0x1], 1 }

</bundles_post_ra>
